<compile_context>
chip_gen: v5e
topology: v5e:2x2
jax: 0.10.0
libtpu: 0.0.40
codegen_flags: <defaults>
</compile_context>

<pallas_src>
import math

import jax
import jax.numpy as jnp
from jax.experimental import pallas as pl
from jax.experimental.pallas import tpu as pltpu


# VMEM budgeting: keep tile working set ~32 MiB and raise the scoped limit to
# 48 MiB (fits v7x's 64 MiB physical with headroom, well under v5e/v6e 128 MiB).
_VMEM_TILE_BUDGET = 32 * 1024 * 1024
_VMEM_LIMIT_BYTES = 48 * 1024 * 1024
_LANE_CANDIDATES = (2048, 1024, 512, 256, 128)


def _row_align(dtype) -> int:
    """Sublane packing multiple: 8 for f32, 16 for bf16, 32 for int8/fp8."""
    itemsize = jnp.dtype(dtype).itemsize
    return max(8, 8 * (4 // itemsize))


# ---------------------------------------------------------------------------
# Kernels
# ---------------------------------------------------------------------------
def _add_kernel(*refs):
    """refs = (in_0, ..., in_{K-1}, out). Elementwise sum of the K input tiles."""
    *in_refs, o_ref = refs
    acc = in_refs[0][...]
    for r in in_refs[1:]:
        acc = acc + r[...]
    o_ref[...] = acc


def _cat_kernel(*refs):
    """refs = (in_0, ..., in_{K-1}, out). Writes each input into its channel slab."""
    *in_refs, o_ref = refs
    off = 0
    for r in in_refs:
        c = r.shape[1]
        o_ref[:, off:off + c, :] = r[...]          # static slices -> views
        off += c


# ---------------------------------------------------------------------------
# Wrappers
# ---------------------------------------------------------------------------
def merge_add(xs):
    """sum(x) over a list of NCHW tensors of identical shape."""
    shape = xs[0].shape
    dtype = xs[0].dtype
    itemsize = jnp.dtype(dtype).itemsize
    total = math.prod(shape)
    k = len(xs)

    # ---- lane-dense flattening: last dim a large multiple of 128 -----------
    lane = next((l for l in _LANE_CANDIDATES if total % l == 0), None)
    padded = total
    if lane is None:                       # rare fallback: pad to 128 multiple
        lane = 128
        padded = ((total + lane - 1) // lane) * lane
    rows = padded // lane

    flats = []
    for x in xs:
        f = x.reshape(-1)
        if padded != total:
            f = jnp.pad(f, (0, padded - total))
        flats.append(f.reshape(rows, lane))

    # ---- row tile: biggest that fits the VMEM budget, sublane-aligned ------
    align = _row_align(dtype)
    streams = (k + 1) * 2                  # K inputs + 1 output, double-buffered
    tr = _VMEM_TILE_BUDGET // (streams * lane * itemsize)
    tr = max(align, (tr // align) * align)
    if rows <= tr:
        tr = rows                          # single block == full array dim (legal)
    grid_r = pl.cdiv(rows, tr)

    spec = pl.BlockSpec((tr, lane), lambda i: (i, 0))

    out = pl.pallas_call(
        _add_kernel,
        out_shape=jax.ShapeDtypeStruct((rows, lane), dtype),
        grid=(grid_r,),
        in_specs=[spec] * k,
        out_specs=spec,
        compiler_params=pltpu.CompilerParams(
            dimension_semantics=("parallel",),
            vmem_limit_bytes=_VMEM_LIMIT_BYTES),
    )(*flats)

    out = out.reshape(-1)
    if padded != total:
        out = out[:total]
    return out.reshape(shape)


def merge_cat(xs):
    """torch.cat(x, dim=1) over a list of NCHW tensors sharing N, H, W."""
    N, _, H, W = xs[0].shape
    hw = H * W
    dtype = xs[0].dtype
    itemsize = jnp.dtype(dtype).itemsize
    cs = [x.shape[1] for x in xs]
    c_total = sum(cs)
    flats = [x.reshape(N, c, hw) for x, c in zip(xs, cs)]

    # ---- HW tile: big multiple of 128 inside the VMEM budget ---------------
    # Per lane column (double-buffered): all input channels + output channels.
    per_lane_bytes = 2 * (sum(cs) + c_total) * itemsize
    tile_hw = max(1, _VMEM_TILE_BUDGET // per_lane_bytes)
    if hw % 128 == 0:
        tile_hw = max(128, (tile_hw // 128) * 128)
        tile_hw = min(tile_hw, hw)
    else:
        tile_hw = hw                       # full lane dim (always legal)
    grid = (N, pl.cdiv(hw, tile_hw))

    in_specs = [pl.BlockSpec((1, c, tile_hw), lambda n, h: (n, 0, h)) for c in cs]
    out_spec = pl.BlockSpec((1, c_total, tile_hw), lambda n, h: (n, 0, h))

    # TODO(synk): when every C_i is a multiple of the sublane packing the slab
    # stores are fully aligned; for arbitrary C_i masked stores remain (cannot
    # pad channels without changing torch.cat semantics).
    out = pl.pallas_call(
        _cat_kernel,
        out_shape=jax.ShapeDtypeStruct((N, c_total, hw), dtype),
        grid=grid,
        in_specs=in_specs,
        out_specs=out_spec,
        compiler_params=pltpu.CompilerParams(
            dimension_semantics=("parallel", "parallel"),
            vmem_limit_bytes=_VMEM_LIMIT_BYTES),
    )(*flats)
    return out.reshape(N, c_total, H, W)


def merge_block(xs, policy):
    if policy == "add":
        return merge_add(xs)
    elif policy == "cat":
        return merge_cat(xs)
    raise ValueError(
        "`merge_policy` must be one of: ['add', 'cat'], got {}".format(policy))


# ---------------------------------------------------------------------------
# Main
# ---------------------------------------------------------------------------
if __name__ == "__main__":
    key = jax.random.PRNGKey(0)
    k1, k2, k3 = jax.random.split(key, 3)

    # Three FPN feature maps: batch=2, channels=4, spatial=16x16 (NCHW).
    x1 = jax.random.normal(k1, (2, 4, 16, 16), dtype=jnp.float32)
    x2 = jax.random.normal(k2, (2, 4, 16, 16), dtype=jnp.float32)
    x3 = jax.random.normal(k3, (2, 4, 16, 16), dtype=jnp.float32)
    xs = [x1, x2, x3]

    # --- policy = 'add' ---
    y_add = merge_block(xs, "add")
    jax.block_until_ready(y_add)
    ref_add = x1 + x2 + x3
    assert y_add.shape == (2, 4, 16, 16)
    assert jnp.allclose(y_add, ref_add, atol=1e-6), "add mismatch"

    # --- policy = 'cat' ---
    y_cat = merge_block(xs, "cat")
    jax.block_until_ready(y_cat)
    ref_cat = jnp.concatenate(xs, axis=1)
    assert y_cat.shape == (2, 12, 16, 16)
    assert jnp.allclose(y_cat, ref_cat, atol=1e-6), "cat mismatch"

    print("KERNEL_OK")
</pallas_src>

<mosaic_0001>
module attributes {stable_mosaic.version = 11 : i64} {
  func.func @_add_kernel(%arg0: i32, %arg1: memref<1x2048xf32, #tpu.memory_space<vmem>>, %arg2: memref<1x2048xf32, #tpu.memory_space<vmem>>, %arg3: memref<1x2048xf32, #tpu.memory_space<vmem>>, %arg4: memref<1x2048xf32, #tpu.memory_space<vmem>>) attributes {dimension_semantics = [#tpu.dimension_semantics<parallel>], iteration_bounds = array<i64: 1>, scalar_prefetch = 0 : i64, scratch_operands = 0 : i64, tpu.core_type = #tpu.core_type<tc>, window_params = [{transform_indices = @transform_0, window_bounds = array<i64: 1, 2048>}, {transform_indices = @transform_1, window_bounds = array<i64: 1, 2048>}, {transform_indices = @transform_2, window_bounds = array<i64: 1, 2048>}, {transform_indices = @transform_3, window_bounds = array<i64: 1, 2048>}]} {
    %c0 = arith.constant 0 : index
    %c0_0 = arith.constant 0 : index
    %0 = vector.load %arg1[%c0, %c0_0] : memref<1x2048xf32, #tpu.memory_space<vmem>>, vector<1x2048xf32>
    %c0_1 = arith.constant 0 : index
    %c0_2 = arith.constant 0 : index
    %1 = vector.load %arg2[%c0_1, %c0_2] : memref<1x2048xf32, #tpu.memory_space<vmem>>, vector<1x2048xf32>
    %2 = arith.addf %0, %1 : vector<1x2048xf32>
    %c0_3 = arith.constant 0 : index
    %c0_4 = arith.constant 0 : index
    %3 = vector.load %arg3[%c0_3, %c0_4] : memref<1x2048xf32, #tpu.memory_space<vmem>>, vector<1x2048xf32>
    %4 = arith.addf %2, %3 : vector<1x2048xf32>
    %c0_5 = arith.constant 0 : index
    %c0_6 = arith.constant 0 : index
    %5 = vector.load %arg4[%c0_5, %c0_6] : memref<1x2048xf32, #tpu.memory_space<vmem>>, vector<1x2048xf32>
    tpu.vector_store %arg4[%c0_5, %c0_6], %4 {strides = array<i32>} : memref<1x2048xf32, #tpu.memory_space<vmem>>, vector<1x2048xf32>,
    return
  }
  func.func @transform_0(%arg0: i32) -> (i32, i32) {
    %c0_i32 = arith.constant 0 : i32
    %c0_i32_0 = arith.constant 0 : i32
    return %arg0, %c0_i32 : i32, i32
  }
  func.func @transform_1(%arg0: i32) -> (i32, i32) {
    %c0_i32 = arith.constant 0 : i32
    %c0_i32_0 = arith.constant 0 : i32
    return %arg0, %c0_i32 : i32, i32
  }
  func.func @transform_2(%arg0: i32) -> (i32, i32) {
    %c0_i32 = arith.constant 0 : i32
    %c0_i32_0 = arith.constant 0 : i32
    return %arg0, %c0_i32 : i32, i32
  }
  func.func @transform_3(%arg0: i32) -> (i32, i32) {
    %c0_i32 = arith.constant 0 : i32
    %c0_i32_0 = arith.constant 0 : i32
    return %arg0, %c0_i32 : i32, i32
  }
}

</mosaic_0001>

<bundles_post_ra>
// kernel: tpu_custom_call.1
= control target key start
LH: loop header
LB: loop body
LE: loop exit
PB: predicated region body
PF: predicated region fallthrough
CT: control target
= control target key end

     0   :  { %8 = vsyncpa [#allocation3], 0  ;;  %s228_s0 = inlined_call_operand.hbm [shape: f32[1,2048], index: 0, kind: input, shape index: {}]   ;;  %s229_s1 = inlined_call_operand.hbm [shape: f32[1,2048], index: 1, kind: input, shape index: {}]   ;;  %s230_s2 = inlined_call_operand.hbm [shape: f32[1,2048], index: 2, kind: input, shape index: {}]   ;;  %s231_s3 = inlined_call_operand.hbm [shape: f32[1,2048], index: 3, kind: output, shape index: {}]  }
   0x1   :  { %9 = vsyncpa [#allocation6], 0  ;;  %s27_s14 = sshll.u32 %s229_s1, 4  ;;  %s28_s14 = int_to_ptr.hbm [resolvable:$true] %s27_s14 }
   0x2   :  { %10 = vsyncpa [#allocation4], 0  ;;  %s192_s15 = smov [#allocation5]   ;;  %s16_s19 = sshll.u32 %s228_s0, 4  ;;  %s17_s19 = int_to_ptr.hbm [resolvable:$true] %s16_s19 }
   0x3   :  { %s29_s16 = sshll.u32 %s192_s15, 4  ;;  %s193_s20 = smov [#allocation2]   ;;  %s30_s16 = int_to_ptr.vmem [resolvable:$true] %s29_s16 }
   0x4   :  { %32 = dma.hbm_to_vmem [thread:$0]  %s28_s14, 256, %s30_s16, [#allocation6]  }
   0x5   :  { %s18_s21 = sshll.u32 %s193_s20, 4  ;;  %s38_s24 = sshll.u32 %s230_s2, 4  ;;  %s19_s21 = int_to_ptr.vmem [resolvable:$true] %s18_s21  ;;  %s39_s24 = int_to_ptr.hbm [resolvable:$true] %s38_s24 }
   0x6   :  { %21 = dma.hbm_to_vmem [thread:$0]  %s17_s19, 256, %s19_s21, [#allocation3]  }
   0x7   :  { %s194_s1 = smov [#allocation7]  }
   0x8   :  { %s40_s25 = sshll.u32 %s194_s1, 4  ;;  %s41_s25 = int_to_ptr.vmem [resolvable:$true] %s40_s25 }
   0x9   :  { %43 = dma.hbm_to_vmem [thread:$0]  %s39_s24, 256, %s41_s25, [#allocation6]  }
   0xa   :  { %186 = dma.done.wait [#allocation3], 256  }
   0xb   :  { %187 = vsyncadd [#allocation3], 4294967040 }
   0xc   :  { %188 = dma.done.wait [#allocation6], 512  }
   0xd   :  { %189 = vsyncadd [#allocation6], 4294966784  ;;  %v56_v0 = vld [vmem:[#allocation2] sm:$0xff]  ;;  %v58_v1 = vld [vmem:[#allocation5] sm:$0xff]  ;;  %s195_s0 = smov [#allocation8]   ;;  %s75_s28 = sshll.u32 %s231_s3, 4  ;;  %s76_s28 = int_to_ptr.hbm [resolvable:$true] %s75_s28 }
   0xe   :  { %v62_v2 = vld [vmem:[#allocation7] sm:$0xff]  ;;  %v60_v3 = vadd.f32 %v58_v1, %v56_v0  ;;  %v57_v4 = vld [vmem:[#allocation2 + $0x8] sm:$0xff]  ;;  %v59_v5 = vld [vmem:[#allocation5 + $0x8] sm:$0xff]  ;;  %s73_s2 = sshll.u32 %s195_s0, 4  ;;  %s74_s2 = int_to_ptr.vmem [resolvable:$true] %s73_s2 }
   0xf   :  { %v63_v6 = vld [vmem:[#allocation7 + $0x8] sm:$0xff]  ;;  %v61_v7 = vadd.f32 %v59_v5, %v57_v4 }
  0x10   :  { %v64_v8 = vadd.f32 %v62_v2, %v60_v3 }
  0x11   :  { %v65_v9 = vadd.f32 %v63_v6, %v61_v7 }
  0x12   :  { %66 = vst [vmem:[#allocation8] sm:$0xff] %v64_v8 }
  0x13   :  { %67 = vst [vmem:[#allocation8 + $0x8] sm:$0xff] %v65_v9 }
  0x14   :  { %78 = dma.vmem_to_hbm [thread:$0]  %s74_s2, 256, %s76_s28, [#allocation4]  }
  0x15   :  { %190 = dma.done.wait [#allocation4], 256  }
  0x16   :  { %191 = vsyncadd [#allocation4], 4294967040 }
  0x17   :  { %83 = vsyncpa [#allocation3], 1 }
  0x18   :  { %84 = vsyncpa [#allocation6], 1 }
  0x19   :  { %85 = vsyncpa [#allocation4], 1 }

</bundles_post_ra>
